<compile_context>
chip_gen: v6e
topology: v6e:2x2x1
jax: 0.10.0
libtpu: 0.0.40
codegen_flags: <defaults>
</compile_context>

<pallas_src>
import math

import jax
import jax.numpy as jnp
from jax.experimental import pallas as pl
from jax.experimental.pallas import tpu as pltpu


def _round_up(x, multiple):
    return ((x + multiple - 1) // multiple) * multiple


_TM_CAP = 512   # sublane-aligned M tile cap
_TN_CAP = 512   # lane-aligned N tile cap
_TK_CAP = 1024  # lane-aligned K tile cap


def _pick_block(dim, cap, align, min_good=128):
    """Choose (block, padded_dim) for one dimension.

    - dim <= cap: use the full extent (always layout-legal), no padding.
    - else: pad to a multiple of `align` and pick the largest aligned block
      <= cap that divides the padded extent (usually the unpadded extent, so
      no pad copy at all).
    - fallback: block = cap with padding to a multiple of cap (rare).
    """
    if dim <= cap:
        return dim, dim
    padded = _round_up(dim, align)
    blk = align
    for cand in range(cap, align - 1, -align):
        if padded % cand == 0:
            blk = cand
            break
    if blk >= min_good:
        return blk, padded
    return cap, _round_up(dim, cap)


def _linear_kernel(x_ref, w_ref, b_ref, o_ref, acc_ref):
    # x_ref: (tm, tk)   w_ref: (tk, tn)  [K-major]   b_ref: (1, tn)
    # o_ref: (tm, tn)   acc_ref: (tm, tn) f32 scratch, resident across K.
    k = pl.program_id(2)

    @pl.when(k == 0)
    def _():
        acc_ref[...] = jnp.zeros_like(acc_ref)

    # MXU-native orientation: rows of x against columns of the K-major W.
    acc_ref[...] += jnp.dot(
        x_ref[...], w_ref[...], preferred_element_type=jnp.float32
    )

    @pl.when(k == pl.num_programs(2) - 1)
    def _():
        o_ref[...] = (acc_ref[...] + b_ref[...]).astype(o_ref.dtype)


def decoder_forward(x, weight, bias):
    """Equivalent of PyTorch: nn.Linear(hidden, output)(x).

    x:      (..., hidden)
    weight: (output, hidden)   -- PyTorch layout
    bias:   (output,)
    """
    hidden = x.shape[-1]
    output = weight.shape[0]
    lead = x.shape[:-1]
    m = math.prod(lead) if lead else 1

    tm, m_pad = _pick_block(m, _TM_CAP, 8)
    tn, o_pad = _pick_block(output, _TN_CAP, 128)
    tk, h_pad = _pick_block(hidden, _TK_CAP, 128)

    # Megacore (v7x): guarantee >= 2 parallel blocks when possible so both
    # TensorCores are busy in the single-M-block decode regime.
    if (m_pad // tm == 1 and o_pad // tn == 1
            and output >= 256 and output % 128 == 0):
        cand = (output // 2 // 128) * 128
        while cand >= 128 and output % cand != 0:
            cand -= 128
        if cand >= 128:
            tn = cand
            o_pad = output

    # --- Operands ------------------------------------------------------
    x2d = x.reshape(m, hidden)
    if (m_pad, h_pad) != (m, hidden):
        # Zero padding: K zeros contribute nothing; padded M rows sliced off.
        x2d = jnp.pad(x2d, ((0, m_pad - m), (0, h_pad - hidden)))

    # One-time K-major weight layout (hidden, output); amortized across calls.
    w_kn = weight.T
    if (h_pad, o_pad) != (hidden, output):
        w_kn = jnp.pad(w_kn, ((0, h_pad - hidden), (0, o_pad - output)))

    b2d = bias.reshape(1, output)
    if o_pad != output:
        b2d = jnp.pad(b2d, ((0, 0), (0, o_pad - output)))

    grid = (m_pad // tm, o_pad // tn, h_pad // tk)
    m_blocks, n_blocks, _ = grid

    x_elt = jnp.dtype(x.dtype).itemsize
    w_elt = jnp.dtype(weight.dtype).itemsize
    b_elt = jnp.dtype(bias.dtype).itemsize

    # Realistic streaming estimate: x re-read per N block, W per M block.
    cost = pl.CostEstimate(
        flops=2 * m * hidden * output,
        transcendentals=0,
        bytes_accessed=(
            m_pad * h_pad * x_elt * n_blocks       # x reads
            + h_pad * o_pad * w_elt * m_blocks     # W reads
            + o_pad * b_elt * m_blocks * n_blocks  # bias reads
            + m_pad * o_pad * x_elt                # output write
        ),
    )

    # Double-buffered tiles + f32 accumulator, with headroom; capped so it is
    # safe on v7x (64 MiB physical VMEM).
    footprint = (
        2 * (tm * tk * x_elt + tk * tn * w_elt + tn * b_elt + tm * tn * x_elt)
        + tm * tn * 4
    )
    vmem_limit = int(min(max(2 * footprint, 32 << 20), 64 << 20))

    out2d = pl.pallas_call(
        _linear_kernel,
        out_shape=jax.ShapeDtypeStruct((m_pad, o_pad), x.dtype),
        grid_spec=pltpu.PrefetchScalarGridSpec(
            num_scalar_prefetch=0,
            grid=grid,
            in_specs=[
                pl.BlockSpec((tm, tk), lambda i, j, k: (i, k)),   # x
                pl.BlockSpec((tk, tn), lambda i, j, k: (k, j)),   # W (K-major)
                pl.BlockSpec((1, tn), lambda i, j, k: (0, j)),    # bias
            ],
            out_specs=pl.BlockSpec((tm, tn), lambda i, j, k: (i, j)),
            scratch_shapes=[pltpu.VMEM((tm, tn), jnp.float32)],
        ),
        compiler_params=pltpu.CompilerParams(
            dimension_semantics=("parallel", "parallel", "arbitrary"),
            vmem_limit_bytes=vmem_limit,
        ),
        cost_estimate=cost,
    )(x2d, w_kn, b2d)

    if (m_pad, o_pad) != (m, output):
        out2d = out2d[:m, :output]
    return out2d.reshape(*lead, output)


if __name__ == "__main__":
    # Small shapes consistent with the module's forward: input (..., hidden).
    batch, seq, hidden, output = 2, 8, 32, 16

    key = jax.random.PRNGKey(0)
    kx, kw, kb = jax.random.split(key, 3)

    x = jax.random.normal(kx, (batch, seq, hidden), dtype=jnp.float32)
    # Deterministic synthetic parameters, mirroring nn.Linear shapes.
    weight = jax.random.normal(kw, (output, hidden), dtype=jnp.float32) * 0.1
    bias = jax.random.normal(kb, (output,), dtype=jnp.float32) * 0.1

    out = decoder_forward(x, weight, bias)
    out = jax.block_until_ready(out)

    # Reference check in plain JAX (same math as torch nn.Linear).
    ref = x @ weight.T + bias
    assert out.shape == (batch, seq, output)
    assert jnp.allclose(out, ref, atol=1e-5, rtol=1e-5)

    print("KERNEL_OK")
</pallas_src>

<mosaic_0001>
module attributes {stable_mosaic.version = 11 : i64} {
  func.func @_linear_kernel(%arg0: i32, %arg1: i32, %arg2: i32, %arg3: memref<16x32xf32, #tpu.memory_space<vmem>>, %arg4: memref<32x16xf32, #tpu.memory_space<vmem>>, %arg5: memref<1x16xf32, #tpu.memory_space<vmem>>, %arg6: memref<16x16xf32, #tpu.memory_space<vmem>>, %arg7: memref<16x16xf32, #tpu.memory_space<vmem>>) attributes {dimension_semantics = [#tpu.dimension_semantics<parallel>, #tpu.dimension_semantics<parallel>, #tpu.dimension_semantics<arbitrary>], iteration_bounds = array<i64: 1, 1, 1>, scalar_prefetch = 0 : i64, scratch_operands = 1 : i64, tpu.core_type = #tpu.core_type<tc>, window_params = [{transform_indices = @transform_0, window_bounds = array<i64: 16, 32>}, {transform_indices = @transform_1, window_bounds = array<i64: 32, 16>}, {transform_indices = @transform_2, window_bounds = array<i64: 1, 16>}, {transform_indices = @transform_3, window_bounds = array<i64: 16, 16>}]} {
    %c0_i32 = arith.constant 0 : i32
    %0 = arith.cmpi eq, %arg2, %c0_i32 : i32
    %1 = arith.extui %0 : i1 to i32
    %c0_i32_0 = arith.constant 0 : i32
    %2 = arith.cmpi ne, %1, %c0_i32_0 : i32
    scf.if %2 {
      %cst_10 = arith.constant 0.000000e+00 : f32
      %12 = vector.broadcast %cst_10 : f32 to vector<16x16xf32>
      %c0_11 = arith.constant 0 : index
      %c0_12 = arith.constant 0 : index
      %13 = vector.load %arg7[%c0_11, %c0_12] : memref<16x16xf32, #tpu.memory_space<vmem>>, vector<16x16xf32>
      tpu.vector_store %arg7[%c0_11, %c0_12], %12 {strides = array<i32>} : memref<16x16xf32, #tpu.memory_space<vmem>>, vector<16x16xf32>,
    } else {
    }
    %c0 = arith.constant 0 : index
    %c0_1 = arith.constant 0 : index
    %3 = vector.load %arg7[%c0, %c0_1] : memref<16x16xf32, #tpu.memory_space<vmem>>, vector<16x16xf32>
    %c0_2 = arith.constant 0 : index
    %c0_3 = arith.constant 0 : index
    %4 = vector.load %arg3[%c0_2, %c0_3] : memref<16x32xf32, #tpu.memory_space<vmem>>, vector<16x32xf32>
    %c0_4 = arith.constant 0 : index
    %c0_5 = arith.constant 0 : index
    %5 = vector.load %arg4[%c0_4, %c0_5] : memref<32x16xf32, #tpu.memory_space<vmem>>, vector<32x16xf32>
    %cst = arith.constant dense<0.000000e+00> : vector<16x16xf32>
    %6 = tpu.matmul %4, %5, %cst {dimension_numbers = #tpu.dot_dimension_numbers<[1], [0], [0], [1], [0, 0, 1, 1], [], []>} : vector<16x32xf32>, vector<32x16xf32>, vector<16x16xf32> -> vector<16x16xf32>
    %7 = arith.addf %3, %6 : vector<16x16xf32>
    %c0_6 = arith.constant 0 : index
    %c0_7 = arith.constant 0 : index
    %8 = vector.load %arg7[%c0_6, %c0_7] : memref<16x16xf32, #tpu.memory_space<vmem>>, vector<16x16xf32>
    tpu.vector_store %arg7[%c0_6, %c0_7], %7 {strides = array<i32>} : memref<16x16xf32, #tpu.memory_space<vmem>>, vector<16x16xf32>,
    %c0_i32_8 = arith.constant 0 : i32
    %9 = arith.cmpi eq, %arg2, %c0_i32_8 : i32
    %10 = arith.extui %9 : i1 to i32
    %c0_i32_9 = arith.constant 0 : i32
    %11 = arith.cmpi ne, %10, %c0_i32_9 : i32
    scf.if %11 {
      %c0_10 = arith.constant 0 : index
      %c0_11 = arith.constant 0 : index
      %12 = vector.load %arg7[%c0_10, %c0_11] : memref<16x16xf32, #tpu.memory_space<vmem>>, vector<16x16xf32>
      %c0_12 = arith.constant 0 : index
      %c0_13 = arith.constant 0 : index
      %13 = vector.load %arg5[%c0_12, %c0_13] : memref<1x16xf32, #tpu.memory_space<vmem>>, vector<1x16xf32>
      %14 = vector.broadcast %13 : vector<1x16xf32> to vector<16x16xf32>
      %15 = arith.addf %12, %14 : vector<16x16xf32>
      %c0_14 = arith.constant 0 : index
      %c0_15 = arith.constant 0 : index
      %16 = vector.load %arg6[%c0_14, %c0_15] : memref<16x16xf32, #tpu.memory_space<vmem>>, vector<16x16xf32>
      tpu.vector_store %arg6[%c0_14, %c0_15], %15 {strides = array<i32>} : memref<16x16xf32, #tpu.memory_space<vmem>>, vector<16x16xf32>,
    } else {
    }
    return
  }
  func.func @transform_0(%arg0: i32, %arg1: i32, %arg2: i32) -> (i32, i32) {
    %c0_i32 = arith.constant 0 : i32
    return %arg0, %arg2 : i32, i32
  }
  func.func @transform_1(%arg0: i32, %arg1: i32, %arg2: i32) -> (i32, i32) {
    %c0_i32 = arith.constant 0 : i32
    return %arg2, %arg1 : i32, i32
  }
  func.func @transform_2(%arg0: i32, %arg1: i32, %arg2: i32) -> (i32, i32) {
    %c0_i32 = arith.constant 0 : i32
    %c0_i32_0 = arith.constant 0 : i32
    return %c0_i32, %arg1 : i32, i32
  }
  func.func @transform_3(%arg0: i32, %arg1: i32, %arg2: i32) -> (i32, i32) {
    %c0_i32 = arith.constant 0 : i32
    return %arg0, %arg1 : i32, i32
  }
}

</mosaic_0001>

<bundles_post_ra>
// kernel: tpu_custom_call.1
= control target key start
LH: loop header
LB: loop body
LE: loop exit
PB: predicated region body
PF: predicated region fallthrough
CT: control target
= control target key end

     0   :  { %vm30_vm0 = vcmask 261120   ;;  %vm19_vm1 = vcmask 130048   ;;  %v195_v3 = vmov 0.0   ;;  %s251_s0 = inlined_call_operand.vmem [shape: f32[16,32], index: 0, kind: input, shape index: {}]   ;;  %s252_s1 = inlined_call_operand.vmem [shape: f32[32,16], index: 1, kind: input, shape index: {}]   ;;  %s253_s2 = inlined_call_operand.vmem [shape: f32[1,16], index: 2, kind: input, shape index: {}]   ;;  %s254_s3 = inlined_call_operand.hbm [shape: f32[16,16], index: 3, kind: output, shape index: {}]  }
   0x1   :  { %v29_v0 = vld [vmem:[%s252_s1 + $0x18] sm:$0xff]  ;;  %v28_v1 = vld [vmem:[%s252_s1 + $0x10] sm:$0xff]  ;;  %v24_v2 = vld [vmem:[%s251_s0] sm:$0xff]  ;;  %21 = vst.msk [vmem:[#allocation2 + $0x8] sm:$0xff] %vm19_vm1, %v195_v3 }
   0x2   :  { %158 = vmatprep.subr.mxu0 %v29_v0  ;;  %20 = vst.msk [vmem:[#allocation2] sm:$0xff] %vm19_vm1, %v195_v3  ;;  %v27_v4 = vld [vmem:[%s252_s1 + $0x8] sm:$0xff]  ;;  %166 = vmatprep.mubr.msk.f32.mxu0 %vm30_vm0, %v24_v2 }
   0x3   :  { %159 = vmatpush3.msra.mxu0 %v29_v0 }
   0x4   :  { %8 = vsyncpa [#allocation4], 0  ;;  %160 = vmatprep.subr.mxu0 %v28_v1  ;;  %v26_v5 = vld [vmem:[%s252_s1] sm:$0xff]  ;;  %v25_v6 = vld [vmem:[%s251_s0 + $0x8] sm:$0xff]  ;;  %s196_s25 = smov [#allocation3]  }
   0x5   :  { %161 = vmatpush3.msra.mxu0 %v28_v1  ;;  %v151_v13 = vld [vmem:[%s253_s2] ss:$0 sm:$0xff]  ;;  %s138_s0 = sshll.u32 %s196_s25, 4  ;;  %s139_s0 = int_to_ptr.vmem [resolvable:$true] %s138_s0 }
   0x6   :  { %162 = vmatprep.subr.mxu0 %v27_v4  ;;  %s173_s26 = scalar_lea.vmem %s139_s0, 256  ;;  %p178_p1 = scmp.lt.s32.totalorder %s139_s0, %s139_s0 }
   0x7   :  { %163 = vmatpush3.msra.mxu0 %v27_v4  ;;  %p174_p0 = scmp.ne.s32.totalorder %s139_s0, %s173_s26  ;;  %p179_p2 = scmp.lt.s32.totalorder %s173_s26, %s173_s26 }
   0x8   :  { %164 = vmatprep.subr.mxu0 %v26_v5  ;;  %v23_v7 = vld [vmem:[#allocation2 + $0x8] sm:$0xff] }
   0x9   :  { %165 = vmatpush3.msra.mxu0 %v26_v5  ;;  %v22_v9 = vld [vmem:[#allocation2] sm:$0xff]  ;;  %p180_p3 = por %p179_p2, %p178_p1 }
   0xa   :  { %167 = vmatmul.mubr.msk.f32.vlgmr.msra.gmra.mxu0 %vm30_vm0, %v25_v6 }
   0xb   :  { %p181_p4 = pnand %p180_p3, %p174_p0 }
  0xca   :  { %v168_v8 = vpop.f32.mrf.mxu0 }
  0xcb   :  { %v113_v10 = vadd.f32 %v168_v8, %v23_v7 }
  0xcc   :  { %v103_v11 = vpop.f32.mrf.mxu0 }
  0xcd   :  { %116 = vst.msk [vmem:[#allocation2 + $0x8] sm:$0xff] %vm19_vm1, %v113_v10  ;;  %v112_v12 = vadd.f32 %v103_v11, %v22_v9 }
  0xcf   :  { %115 = vst.msk [vmem:[#allocation2] sm:$0xff] %vm19_vm1, %v112_v12 }
  0xd4   :  { %v121_v14 = vld [vmem:[#allocation2 + $0x8] sm:$0xff] }
  0xd5   :  { %v130_v15 = vadd.f32 %v151_v13, %v121_v14 }
  0xd6   :  { %v120_v16 = vld [vmem:[#allocation2] sm:$0xff] }
  0xd7   :  { %v129_v17 = vadd.f32 %v151_v13, %v120_v16  ;;  %132 = vst.msk [vmem:[#allocation3 + $0x8] sm:$0xff] %vm19_vm1, %v130_v15 }
  0xd9   :  { %131 = vst.msk [vmem:[#allocation3] sm:$0xff] %vm19_vm1, %v129_v17 }
  0xda   :  { %184 = shalt.err (!%p181_p4)
}
  0xdb   :  { %s197_s27 = smov 128   ;;  %s198_s2 = smov 8  }
  0xdc   :  { %144 = dma.vmem_to_hbm [thread:$0]  %s139_s0, 256, %s254_s3, [#allocation4], %s197_s27, %s197_s27, %s198_s2  }
  0xdd   :  { %193 = dma.done.wait [#allocation4], 256  }
  0xde   :  { %194 = vsyncadd [#allocation4], 4294967040 }
  0xdf   :  { %148 = vsyncpa [#allocation4], 1 }

</bundles_post_ra>
